<compile_context>
chip_gen: v7x
topology: tpu7x:2x2x1
jax: 0.10.0
libtpu: 0.0.40
codegen_flags: <defaults>
</compile_context>

<pallas_src>
import functools

import jax
import jax.numpy as jnp
from jax.experimental import pallas as pl
from jax.experimental.pallas import tpu as pltpu

# Conv hyper-params implied by the module __init__.
C_IN = 3
C_OUT = 64
KH = KW = 3
C_PAD = 8          # channel axis padded so every slab copy is an aligned tile


def _conv_kernel(x_ref, w_ref, b_ref, o_ref, patch_ref, *,
                 kh_size, kw_size, img_w, n_anchors):
    # x_ref     : (1, C_PAD, HWp)          VMEM  flattened, zero-padded image
    # w_ref     : (C_OUT, KH*KW*C_PAD)     VMEM  pre-packed weight
    # b_ref     : (C_OUT, 1)               VMEM
    # o_ref     : (1, C_OUT, A = H*W)      VMEM  NCHW-flat, lane-dense output
    # patch_ref : (KH*KW*C_PAD, A)         VMEM scratch (im2col patch)
    c_pad = x_ref.shape[1]
    c_out = o_ref.shape[1]

    # Assemble the im2col patch with KH*KW static, sublane-aligned slab copies.
    # Each copy is a lane-shifted (C_PAD, A) move; no reshapes / relayouts.
    for kh in range(kh_size):
        for kw in range(kw_size):
            tap = kh * kw_size + kw
            off = kh * img_w + kw
            patch_ref[tap * c_pad:(tap + 1) * c_pad, :] = (
                x_ref[0, :, off:off + n_anchors])

    # One MXU matmul over the packed contraction axis (K = KH*KW*C_PAD = 72).
    acc = jnp.dot(w_ref[...], patch_ref[...],
                  preferred_element_type=jnp.float32)
    acc = acc + b_ref[...]                      # (C_OUT, 1) lane-broadcast
    o_ref[...] = acc.reshape(1, c_out, n_anchors).astype(o_ref.dtype)


def conv2d_pallas(x_pad, w_packed, bias_col, *, img_h, img_w, kh, kw):
    """x_pad: (N, C_PAD, HWp); w_packed: (C_OUT, KH*KW*C_PAD); bias_col: (C_OUT, 1)."""
    n, c_pad, hwp = x_pad.shape
    c_out, kkc = w_packed.shape
    a = img_h * img_w                 # anchor columns per image (extra ones discarded)

    kernel = functools.partial(_conv_kernel, kh_size=kh, kw_size=kw,
                               img_w=img_w, n_anchors=a)

    return pl.pallas_call(
        kernel,
        out_shape=jax.ShapeDtypeStruct((n, c_out, a), x_pad.dtype),
        grid_spec=pltpu.PrefetchScalarGridSpec(
            num_scalar_prefetch=0,
            grid=(n,),
            in_specs=[
                pl.BlockSpec((1, c_pad, hwp), lambda i: (i, 0, 0)),
                pl.BlockSpec((c_out, kkc), lambda i: (0, 0)),
                pl.BlockSpec((c_out, 1), lambda i: (0, 0)),
            ],
            out_specs=pl.BlockSpec((1, c_out, a), lambda i: (i, 0, 0)),
            scratch_shapes=[pltpu.VMEM((kkc, a), jnp.float32)],
        ),
        compiler_params=pltpu.CompilerParams(
            dimension_semantics=("parallel",)),
    )(x_pad, w_packed, bias_col)


def tudui_forward(x_nchw, w_oihw, bias):
    """PyTorch-equivalent forward: NCHW in, NCHW out (VALID padding, stride 1)."""
    n, c_in, h, w = x_nchw.shape
    c_out, _, kh, kw = w_oihw.shape
    h_out, w_out = h - kh + 1, w - kw + 1

    # ---- layout plumbing (cheap XLA glue, no compute hoisted) ----
    # Flatten H,W; pad channels 3 -> C_PAD and add a (KH-1)*W + (KW-1) zero
    # halo so every in-kernel tap slice stays in bounds.
    hwp = h * w + (kh - 1) * w + (kw - 1)
    x_flat = x_nchw.reshape(n, c_in, h * w)
    x_pad = jnp.pad(x_flat, ((0, 0), (0, C_PAD - c_in), (0, hwp - h * w)))

    # Pack weight OIHW -> (Cout, KH*KW*C_PAD); column = (kh*KW + kw)*C_PAD + ci.
    w_t = jnp.transpose(w_oihw, (0, 2, 3, 1))                  # (O, KH, KW, I)
    w_t = jnp.pad(w_t, ((0, 0), (0, 0), (0, 0), (0, C_PAD - c_in)))
    w_packed = w_t.reshape(c_out, kh * kw * C_PAD)

    bias_col = bias.reshape(c_out, 1)

    y = conv2d_pallas(x_pad, w_packed, bias_col,
                      img_h=h, img_w=w, kh=kh, kw=kw)          # (N, Cout, H*W)
    # Kernel output is already NCHW-contiguous: free reshape + valid slice.
    return y.reshape(n, c_out, h, w)[:, :, :h_out, :w_out]


if __name__ == "__main__":
    key = jax.random.PRNGKey(0)
    k_x, k_w, k_b = jax.random.split(key, 3)

    # Small shapes consistent with Conv2d(3, 64, 3): batch=2, 16x16 spatial.
    x = jax.random.normal(k_x, (2, C_IN, 16, 16), dtype=jnp.float32)

    # Deterministic synthetic parameters (PyTorch OIHW weight layout).
    fan_in = C_IN * KH * KW
    bound = 1.0 / (fan_in ** 0.5)
    w = jax.random.uniform(k_w, (C_OUT, C_IN, KH, KW),
                           minval=-bound, maxval=bound, dtype=jnp.float32)
    b = jax.random.uniform(k_b, (C_OUT,),
                           minval=-bound, maxval=bound, dtype=jnp.float32)

    y = tudui_forward(x, w, b)
    y = jax.block_until_ready(y)

    # Sanity-check against XLA's conv (same NCHW/OIHW convention as PyTorch).
    y_ref = jax.lax.conv_general_dilated(
        x, w, window_strides=(1, 1), padding="VALID",
        dimension_numbers=("NCHW", "OIHW", "NCHW"),
    ) + b.reshape(1, C_OUT, 1, 1)
    y_ref = jax.block_until_ready(y_ref)

    assert y.shape == (2, C_OUT, 14, 14), y.shape
    assert jnp.allclose(y, y_ref, atol=1e-4, rtol=1e-4), \
        float(jnp.max(jnp.abs(y - y_ref)))
    print("KERNEL_OK")
</pallas_src>

<mosaic_0001>
module attributes {stable_mosaic.version = 11 : i64} {
  func.func @_conv_kernel(%arg0: i32, %arg1: memref<1x8x290xf32, #tpu.memory_space<vmem>>, %arg2: memref<64x72xf32, #tpu.memory_space<vmem>>, %arg3: memref<64x1xf32, #tpu.memory_space<vmem>>, %arg4: memref<1x64x256xf32, #tpu.memory_space<vmem>>, %arg5: memref<72x256xf32, #tpu.memory_space<vmem>>) attributes {dimension_semantics = [#tpu.dimension_semantics<parallel>], iteration_bounds = array<i64: 2>, scalar_prefetch = 0 : i64, scratch_operands = 1 : i64, tpu.core_type = #tpu.core_type<tc>, window_params = [{transform_indices = @transform_0, window_bounds = array<i64: 1, 8, 290>}, {pipeline_mode = #tpu.pipeline_mode<synchronous>, transform_indices = @transform_1, window_bounds = array<i64: 64, 72>}, {pipeline_mode = #tpu.pipeline_mode<synchronous>, transform_indices = @transform_2, window_bounds = array<i64: 64, 1>}, {transform_indices = @transform_3, window_bounds = array<i64: 1, 64, 256>}]} {
    %c0 = arith.constant 0 : index
    %c0_0 = arith.constant 0 : index
    %c0_1 = arith.constant 0 : index
    %0 = vector.load %arg1[%c0, %c0_0, %c0_1] : memref<1x8x290xf32, #tpu.memory_space<vmem>>, vector<1x8x256xf32>
    %1 = vector.shape_cast %0 : vector<1x8x256xf32> to vector<8x256xf32>
    %c0_2 = arith.constant 0 : index
    %c0_3 = arith.constant 0 : index
    %2 = vector.load %arg5[%c0_2, %c0_3] : memref<72x256xf32, #tpu.memory_space<vmem>>, vector<8x256xf32>
    tpu.vector_store %arg5[%c0_2, %c0_3], %1 {strides = array<i32>} : memref<72x256xf32, #tpu.memory_space<vmem>>, vector<8x256xf32>,
    %c0_4 = arith.constant 0 : index
    %c0_5 = arith.constant 0 : index
    %c1 = arith.constant 1 : index
    %3 = vector.load %arg1[%c0_4, %c0_5, %c1] : memref<1x8x290xf32, #tpu.memory_space<vmem>>, vector<1x8x256xf32>
    %4 = vector.shape_cast %3 : vector<1x8x256xf32> to vector<8x256xf32>
    %c8 = arith.constant 8 : index
    %c0_6 = arith.constant 0 : index
    %5 = vector.load %arg5[%c8, %c0_6] : memref<72x256xf32, #tpu.memory_space<vmem>>, vector<8x256xf32>
    tpu.vector_store %arg5[%c8, %c0_6], %4 {strides = array<i32>} : memref<72x256xf32, #tpu.memory_space<vmem>>, vector<8x256xf32>,
    %c0_7 = arith.constant 0 : index
    %c0_8 = arith.constant 0 : index
    %c2 = arith.constant 2 : index
    %6 = vector.load %arg1[%c0_7, %c0_8, %c2] : memref<1x8x290xf32, #tpu.memory_space<vmem>>, vector<1x8x256xf32>
    %7 = vector.shape_cast %6 : vector<1x8x256xf32> to vector<8x256xf32>
    %c16 = arith.constant 16 : index
    %c0_9 = arith.constant 0 : index
    %8 = vector.load %arg5[%c16, %c0_9] : memref<72x256xf32, #tpu.memory_space<vmem>>, vector<8x256xf32>
    tpu.vector_store %arg5[%c16, %c0_9], %7 {strides = array<i32>} : memref<72x256xf32, #tpu.memory_space<vmem>>, vector<8x256xf32>,
    %c0_10 = arith.constant 0 : index
    %c0_11 = arith.constant 0 : index
    %c16_12 = arith.constant 16 : index
    %9 = vector.load %arg1[%c0_10, %c0_11, %c16_12] : memref<1x8x290xf32, #tpu.memory_space<vmem>>, vector<1x8x256xf32>
    %10 = vector.shape_cast %9 : vector<1x8x256xf32> to vector<8x256xf32>
    %c24 = arith.constant 24 : index
    %c0_13 = arith.constant 0 : index
    %11 = vector.load %arg5[%c24, %c0_13] : memref<72x256xf32, #tpu.memory_space<vmem>>, vector<8x256xf32>
    tpu.vector_store %arg5[%c24, %c0_13], %10 {strides = array<i32>} : memref<72x256xf32, #tpu.memory_space<vmem>>, vector<8x256xf32>,
    %c0_14 = arith.constant 0 : index
    %c0_15 = arith.constant 0 : index
    %c17 = arith.constant 17 : index
    %12 = vector.load %arg1[%c0_14, %c0_15, %c17] : memref<1x8x290xf32, #tpu.memory_space<vmem>>, vector<1x8x256xf32>
    %13 = vector.shape_cast %12 : vector<1x8x256xf32> to vector<8x256xf32>
    %c32 = arith.constant 32 : index
    %c0_16 = arith.constant 0 : index
    %14 = vector.load %arg5[%c32, %c0_16] : memref<72x256xf32, #tpu.memory_space<vmem>>, vector<8x256xf32>
    tpu.vector_store %arg5[%c32, %c0_16], %13 {strides = array<i32>} : memref<72x256xf32, #tpu.memory_space<vmem>>, vector<8x256xf32>,
    %c0_17 = arith.constant 0 : index
    %c0_18 = arith.constant 0 : index
    %c18 = arith.constant 18 : index
    %15 = vector.load %arg1[%c0_17, %c0_18, %c18] : memref<1x8x290xf32, #tpu.memory_space<vmem>>, vector<1x8x256xf32>
    %16 = vector.shape_cast %15 : vector<1x8x256xf32> to vector<8x256xf32>
    %c40 = arith.constant 40 : index
    %c0_19 = arith.constant 0 : index
    %17 = vector.load %arg5[%c40, %c0_19] : memref<72x256xf32, #tpu.memory_space<vmem>>, vector<8x256xf32>
    tpu.vector_store %arg5[%c40, %c0_19], %16 {strides = array<i32>} : memref<72x256xf32, #tpu.memory_space<vmem>>, vector<8x256xf32>,
    %c0_20 = arith.constant 0 : index
    %c0_21 = arith.constant 0 : index
    %c32_22 = arith.constant 32 : index
    %18 = vector.load %arg1[%c0_20, %c0_21, %c32_22] : memref<1x8x290xf32, #tpu.memory_space<vmem>>, vector<1x8x256xf32>
    %19 = vector.shape_cast %18 : vector<1x8x256xf32> to vector<8x256xf32>
    %c48 = arith.constant 48 : index
    %c0_23 = arith.constant 0 : index
    %20 = vector.load %arg5[%c48, %c0_23] : memref<72x256xf32, #tpu.memory_space<vmem>>, vector<8x256xf32>
    tpu.vector_store %arg5[%c48, %c0_23], %19 {strides = array<i32>} : memref<72x256xf32, #tpu.memory_space<vmem>>, vector<8x256xf32>,
    %c0_24 = arith.constant 0 : index
    %c0_25 = arith.constant 0 : index
    %c33 = arith.constant 33 : index
    %21 = vector.load %arg1[%c0_24, %c0_25, %c33] : memref<1x8x290xf32, #tpu.memory_space<vmem>>, vector<1x8x256xf32>
    %22 = vector.shape_cast %21 : vector<1x8x256xf32> to vector<8x256xf32>
    %c56 = arith.constant 56 : index
    %c0_26 = arith.constant 0 : index
    %23 = vector.load %arg5[%c56, %c0_26] : memref<72x256xf32, #tpu.memory_space<vmem>>, vector<8x256xf32>
    tpu.vector_store %arg5[%c56, %c0_26], %22 {strides = array<i32>} : memref<72x256xf32, #tpu.memory_space<vmem>>, vector<8x256xf32>,
    %c0_27 = arith.constant 0 : index
    %c0_28 = arith.constant 0 : index
    %c34 = arith.constant 34 : index
    %24 = vector.load %arg1[%c0_27, %c0_28, %c34] : memref<1x8x290xf32, #tpu.memory_space<vmem>>, vector<1x8x256xf32>
    %25 = vector.shape_cast %24 : vector<1x8x256xf32> to vector<8x256xf32>
    %c64 = arith.constant 64 : index
    %c0_29 = arith.constant 0 : index
    %26 = vector.load %arg5[%c64, %c0_29] : memref<72x256xf32, #tpu.memory_space<vmem>>, vector<8x256xf32>
    tpu.vector_store %arg5[%c64, %c0_29], %25 {strides = array<i32>} : memref<72x256xf32, #tpu.memory_space<vmem>>, vector<8x256xf32>,
    %c0_30 = arith.constant 0 : index
    %c0_31 = arith.constant 0 : index
    %27 = vector.load %arg2[%c0_30, %c0_31] : memref<64x72xf32, #tpu.memory_space<vmem>>, vector<64x72xf32>
    %c0_32 = arith.constant 0 : index
    %c0_33 = arith.constant 0 : index
    %28 = vector.load %arg5[%c0_32, %c0_33] : memref<72x256xf32, #tpu.memory_space<vmem>>, vector<72x256xf32>
    %cst = arith.constant dense<0.000000e+00> : vector<64x256xf32>
    %29 = tpu.matmul %27, %28, %cst {dimension_numbers = #tpu.dot_dimension_numbers<[1], [0], [0], [1], [0, 0, 1, 1], [], []>} : vector<64x72xf32>, vector<72x256xf32>, vector<64x256xf32> -> vector<64x256xf32>
    %c0_34 = arith.constant 0 : index
    %c0_35 = arith.constant 0 : index
    %30 = vector.load %arg3[%c0_34, %c0_35] : memref<64x1xf32, #tpu.memory_space<vmem>>, vector<64x1xf32>
    %31 = vector.broadcast %30 : vector<64x1xf32> to vector<64x256xf32>
    %32 = arith.addf %29, %31 : vector<64x256xf32>
    %33 = vector.shape_cast %32 : vector<64x256xf32> to vector<1x64x256xf32>
    %c0_36 = arith.constant 0 : index
    %c0_37 = arith.constant 0 : index
    %c0_38 = arith.constant 0 : index
    %34 = vector.load %arg4[%c0_36, %c0_37, %c0_38] : memref<1x64x256xf32, #tpu.memory_space<vmem>>, vector<1x64x256xf32>
    tpu.vector_store %arg4[%c0_36, %c0_37, %c0_38], %33 {strides = array<i32>} : memref<1x64x256xf32, #tpu.memory_space<vmem>>, vector<1x64x256xf32>,
    return
  }
  func.func @transform_0(%arg0: i32) -> (i32, i32, i32) {
    %c0_i32 = arith.constant 0 : i32
    %c0_i32_0 = arith.constant 0 : i32
    %c0_i32_1 = arith.constant 0 : i32
    return %arg0, %c0_i32, %c0_i32_0 : i32, i32, i32
  }
  func.func @transform_1(%arg0: i32) -> (i32, i32) {
    %c0_i32 = arith.constant 0 : i32
    %c0_i32_0 = arith.constant 0 : i32
    %c0_i32_1 = arith.constant 0 : i32
    return %c0_i32, %c0_i32_0 : i32, i32
  }
  func.func @transform_2(%arg0: i32) -> (i32, i32) {
    %c0_i32 = arith.constant 0 : i32
    %c0_i32_0 = arith.constant 0 : i32
    %c0_i32_1 = arith.constant 0 : i32
    return %c0_i32, %c0_i32_0 : i32, i32
  }
  func.func @transform_3(%arg0: i32) -> (i32, i32, i32) {
    %c0_i32 = arith.constant 0 : i32
    %c0_i32_0 = arith.constant 0 : i32
    %c0_i32_1 = arith.constant 0 : i32
    return %arg0, %c0_i32, %c0_i32_0 : i32, i32, i32
  }
}

</mosaic_0001>

<bundles_post_ra>
// kernel: tpu_custom_call.1
= control target key start
LH: loop header
LB: loop body
LE: loop exit
PB: predicated region body
PF: predicated region fallthrough
CT: control target
= control target key end

     0   :  { %8 = vsyncpa [#allocation4], 0  ;;  %s1175_s0 = inlined_call_operand.hbm [shape: f32[2,8,290], index: 0, kind: input, shape index: {}]   ;;  %s1176_s1 = inlined_call_operand.vmem [shape: f32[64,72], index: 1, kind: input, shape index: {}]   ;;  %s1177_s2 = inlined_call_operand.vmem [shape: f32[64,1], index: 2, kind: input, shape index: {}]   ;;  %s1178_s3 = inlined_call_operand.hbm [shape: f32[2,64,256], index: 3, kind: output, shape index: {}]  }
   0x1   :  { %10 = vsyncpa [#allocation4 + $0x1], 0 }
   0x2   :  { %11 = vsyncpa [#allocation5], 0 }
   0x3   :  { %13 = vsyncpa [#allocation5 + $0x1], 0  ;;  %s934_s12 = smov 0   ;;  %s936_s13 = smov 0  }
   0x4   :  { %s938_s14 = smov 0   ;;  %s940_s15 = smov 0  }
   0x5 LB: > { %s955_s16 = sadd.s32 4294967295, %s898_s15   ;;  %s658_s17 = sadd.s32 4294967294, %s898_s15   ;;  %s898_s15 = sphi %s940_s15, %s1192_s15   ;;  %s894_s14 = sphi %s938_s14, %s1191_s14   ;;  %s890_s13 = sphi %s936_s13, %s1190_s13   ;;  %s886_s12 = sphi %s934_s12, %s1189_s12  }
   0x6   : > { %s959_s18 = sadd.s32 1, %s898_s15   ;;  %s26_s19 = sadd.s32 1, %s894_s14 }
   0x7   : > { %s23_s20 = ssub.s32 %s898_s15, %s959_s18  ;;  %p33_p0 = scmp.ne.s32.totalorder %s894_s14, %s890_s13 }
   0x8   : > { %p24_p1 = scmp.eq.s32.totalorder %s23_s20, 0  ;;  %p34_p2 = scmp.eq.s32.totalorder %s898_s15, 0 }
   0x9   : > { %p39_p3 = scmp.ne.s32.totalorder %s890_s13, %s886_s12  ;;  %p40_p4 = scmp.eq.s32.totalorder %s955_s16, 0 }
   0xa   : > { %s971_s21 = scalar_select %p24_p1, %s894_s14, %s26_s19  }
   0xb   : > { %p35_p5 = por %p34_p2, %p33_p0  ;;  %p973_p6 = por %p40_p4, %p39_p3 }
   0xc   : > { %p105_p7 = scmp.eq.s32.totalorder %s955_s16, 1  ;;  %p111_p8 = scmp.eq.s32.totalorder %s658_s17, 1 }
   0xd   : > { %p719_p10 = scmp.lt.s32.totalorder %s898_s15, 2  ;;  %s137_s25 = sand.u32 1, %s894_s14  }
   0xe   : > { %p980_p11 = por %p105_p7, %p33_p0  ;;  %p984_p12 = por %p111_p8, %p39_p3 }
   0xf   : > { %s705_s26 = smul.u32 384, %s898_s15  ;;  %p995_p13 = pnand %p719_p10, %p35_p5 }
  0x10   : > { %s1181_s23 = scalar_select %p980_p11, 1, 0 }
  0x11   : > { %s1182_s24 = scalar_select %p984_p12, 1, 0 }
  0x12   : > { %s704_s27 = smul.u32 24, %s137_s25  ;;  %s993_s30 = scalar_lea.hbm %s1175_s0, %s705_s26 }
  0x13   : > { %s138_s7 = scalar_lea.sflag [#allocation4], %s137_s25  ;;  %s802_s8 = scalar_lea.hbm %s993_s30, 384 }
  0x14   : > { %s141_s5 = scalar_lea.vmem [#allocation3], %s704_s27  ;;  %p803_p2 = scmp.ne.s32.totalorder %s993_s30, %s802_s8 }
  0x15   : > { %s149_s6 = sshll.u32 %s141_s5, 4  ;;  %p804_p3 = pneg %p995_p13  ;;  %s1000_s6 = int_to_ptr.vmem [resolvable:$true] %s149_s6 }
  0x16   : > { %s807_s11 = scalar_lea.hbm %s1175_s0, 768  ;;  %p808_p7 = scmp.lt.u32.totalorder %s993_s30, %s1175_s0 }
  0x17   : > { %p805_p4 = pnand %p804_p3, %p803_p2  ;;  %p809_p8 = scmp.lt.u32.totalorder %s807_s11, %s802_s8 }
  0x18   : > { %p811_p9 = scmp.lt.u32.totalorder %s802_s8, %s993_s30 }
  0x19   : > { %p806_p5 = pneg %p805_p4  ;;  %p810_p10 = por %p809_p8, %p808_p7 }
  0x1b   : > { %p812_p0 = por %p811_p9, %p810_p10 }
  0x1d   : > { %p813_p1 = pnand %p812_p0, %p806_p5 }
  0x1f   : > { %816 = shalt.err (!%p813_p1)
}
  0x20   : > { %s817_s20 = scalar_lea.vmem %s1000_s6, 384  ;;  %s900_s25 = smov [#allocation3]  }
  0x21   : > { %p818_p2 = scmp.ne.s32.totalorder %s1000_s6, %s817_s20  ;;  %s822_s26 = sshll.u32 %s900_s25, 4  ;;  %s823_s26 = int_to_ptr.vmem [resolvable:$false] %s822_s26 }
  0x22   : > { %s824_s27 = scalar_lea.vmem %s823_s26, 768  ;;  %p825_p11 = scmp.lt.s32.totalorder %s1000_s6, %s823_s26 }
  0x23   : > { %p820_p4 = pnand %p818_p2, %p804_p3  ;;  %p826_p7 = scmp.lt.s32.totalorder %s824_s27, %s817_s20 }
  0x25   : > { %p821_p12 = pneg %p820_p4  ;;  %p827_p8 = por %p826_p7, %p825_p11 }
  0x27   : > { %p828_p9 = pnand %p827_p8, %p821_p12 }
  0x29   : > { %831 = shalt.err (!%p828_p9)
}
  0x2a   : > { %714 = dma.hbm_to_vmem [thread:$0]  (!%p995_p13), %s993_s30, 384, %s1000_s6, %s138_s7  }
  0x2b   : > { %p1184_p0 = scmp.lt.s32.totalorder %s898_s15, 3  ;;  %p1185_p1 = scmp.ge.s32.totalorder %s898_s15, 1 }
  0x2d   : > { %p155_p3 = pnand %p1185_p1, %p1184_p0 }
  0x2e   : > { %s1033_s28 = sand.u32 (!%p155_p3), 1, %s890_s13  }
  0x2f   : > { %158 = sbr.rel (%p155_p3) target bundleno = 449 (0x1c1), region = 32  ;;  %s161_s5 = scalar_lea.sflag (!%p155_p3), [#allocation4], %s1033_s28 }
  0x30   : > { %s706_s29 = smul.u32 (!%p155_p3), 24, %s1033_s28 }
  0x32   : > { %s164_s8 = scalar_lea.vmem (!%p155_p3), [#allocation3], %s706_s29 }
  0x36   : > { %877 = dma.done.wait (%p973_p6), %s161_s5, 384  }
  0x37   : > { %879 = vsyncadd (%p973_p6), %s161_s5, 4294966912  ;;  %v211_v0 = vld [vmem:[%s164_s8 + $0x8] sm:$0xff]  ;;  %v212_v1 = vld [vmem:[%s164_s8 + $0x10] sm:$0xff]  ;;  %s901_s30 = smov 126   ;;  %s902_s4 = smov 127   ;;  %v908_v4 = vmov 0.0  }
  0x38   : > { %v770_v2 = vpack.i.bf16 %v212_v1, %v211_v0  ;;  %v191_v3 = vld [vmem:[%s164_s8] sm:$0xff]  ;;  %s903_s6 = smov 112   ;;  %s904_s7 = smov 110   ;;  %506 = vmatprep.mubr.f32.mxu0 %v908_v4  ;;  %530 = vmatprep.mubr.f32.mxu1 %v908_v4  ;;  %v910_v6 = vmov 0   ;;  %v370_v7 = vld [vmem:[%s1177_s2 + $0x8] sm:$0xff]  ;;  %v371_v8 = vld [vmem:[%s1177_s2 + $0x10] sm:$0xff] }
  0x39   : > { %s905_s9 = smov 111   ;;  %s906_s22 = smov 95   ;;  %v369_v5 = vld [vmem:[%s1177_s2] sm:$0xff]  ;;  %800 = vset.pattern.permute.xlu1 %v910_v6  ;;  %801 = vset.pattern.permute.xlu0 %v910_v6  ;;  %v372_v10 = vld [vmem:[%s1177_s2 + $0x18] sm:$0xff]  ;;  %v375_v11 = vld [vmem:[%s1177_s2 + $0x30] sm:$0xff]  ;;  %vm203_vm0 = vcmask 1039360  }
  0x3a   : > { %771 = vrot.lane.b32.xlu1 %v770_v2, %s901_s30  ;;  %766 = vrot.lane.b32.xlu0 %v770_v2, %s902_s4  ;;  %s907_s10 = smov 96   ;;  %s909_s11 = smov 94   ;;  %v373_v9 = vld [vmem:[%s1177_s2 + $0x20] sm:$0xff]  ;;  %v374_v12 = vld [vmem:[%s1177_s2 + $0x28] sm:$0xff]  ;;  %vm241_vm1 = vcmask 916480   ;;  %vm222_vm2 = vcmask 1031168  }
  0x3b   : > { %v376_v13 = vld [vmem:[%s1177_s2 + $0x38] sm:$0xff]  ;;  %vm279_vm3 = vcmask 900096   ;;  %vm260_vm4 = vcmask 908288   ;;  %vm317_vm5 = vcmask 777216   ;;  %vm298_vm6 = vcmask 785408   ;;  %v347_v6 = vld [vmem:[%s1176_s1 + $0x20] sm:$0xff] }
  0x3c   : > { %vm336_vm7 = vcmask 769024   ;;  %vm417_vm8 = vcmask 588800   ;;  %s677_s17 = sshll.u32 %s955_s16, 11  ;;  %s572_s26 = scalar_lea.sflag [#allocation5], %s1033_s28 }
  0x3d   : > { %s1125_s25 = scalar_lea.hbm %s1178_s3, %s677_s17  ;;  %p1186_p11 = scmp.ne.s32.totalorder %s1181_s23, 0 }
  0x3e   : > { %776 = vrot.lane.b32.xlu1 %v770_v2, %s903_s6  ;;  %197 = vrot.lane.b32.xlu0 %v191_v3, %s902_s4  ;;  %s911_s29 = smov [#allocation6]  }
  0x3f   : > { %s836_s5 = sshll.u32 %s911_s29, 4  ;;  %s837_s5 = int_to_ptr.vmem [resolvable:$false] %s836_s5 }
  0x40   : > { %s838_s8 = scalar_lea.vmem %s837_s5, 4096 }
  0x42   : > { %235 = vrot.lane.b32.xlu1 %v191_v3, %s903_s6  ;;  %216 = vrot.lane.b32.xlu0 %v191_v3, %s901_s30 }
  0x46   : > { %786 = vrot.lane.b32.xlu1 %v770_v2, %s904_s7  ;;  %781 = vrot.lane.b32.xlu0 %v770_v2, %s905_s9 }
  0x4a   : > { %273 = vrot.lane.b32.xlu1 %v191_v3, %s904_s7  ;;  %254 = vrot.lane.b32.xlu0 %v191_v3, %s905_s9 }
  0x4e   : > { %796 = vrot.lane.b32.xlu1 %v770_v2, %s906_s22  ;;  %791 = vrot.lane.b32.xlu0 %v770_v2, %s907_s10 }
  0x52   : > { %311 = vrot.lane.b32.xlu1 %v191_v3, %s906_s22  ;;  %292 = vrot.lane.b32.xlu0 %v191_v3, %s907_s10  ;;  %s663_s10 = sshll.u32 %s1033_s28, 7 }
  0x56   : > { %334 = vrot.lane.b32.xlu1 %v212_v1, %s909_s11  ;;  %332 = vrot.lane.b32.xlu0 %v211_v0, %s909_s11 }
  0x5a   : > { %330 = vrot.lane.b32.xlu0 %v191_v3, %s909_s11  ;;  %379 = vperm.xlu1 %800, %v369_v5   ;;  %v343_v5 = vld [vmem:[%s1176_s1] sm:$0xff]  ;;  %s1106_s11 = scalar_lea.vmem [#allocation6], %s663_s10 }
  0x5b   : > { %s585_s19 = sshll.u32 %s1106_s11, 4  ;;  %s1127_s19 = int_to_ptr.vmem [resolvable:$true] %s585_s19 }
  0x5c   : > { %s832_s27 = scalar_lea.vmem %s1127_s19, 2048  ;;  %p839_p5 = scmp.lt.s32.totalorder %s1127_s19, %s837_s5 }
  0x5d   : > { %p833_p6 = scmp.ne.s32.totalorder %s1127_s19, %s832_s27  ;;  %p840_p10 = scmp.lt.s32.totalorder %s838_s8, %s832_s27 }
  0x5e   : > { %384 = vperm.xlu0 %801, %v370_v7   ;;  %389 = vperm.xlu1 %800, %v371_v8   ;;  %v344_v8 = vld [vmem:[%s1176_s1 + $0x8] sm:$0xff] }
  0x5f   : > { %p834_p12 = pnand %p833_p6, %p1186_p11  ;;  %p841_p2 = por %p840_p10, %p839_p5 }
  0x61   : > { %p835_p13 = pneg %p834_p12 }
  0x62   : > { %399 = vperm.xlu0 %801, %v373_v9   ;;  %394 = vperm.xlu1 %800, %v372_v10   ;;  %v348_v9 = vld [vmem:[%s1176_s1 + $0x28] sm:$0xff]  ;;  %v345_v10 = vld [vmem:[%s1176_s1 + $0x10] sm:$0xff] }
  0x63   : > { %p842_p4 = pnand %p841_p2, %p835_p13 }
  0x66   : > { %409 = vperm.xlu0 %801, %v375_v11   ;;  %404 = vperm.xlu1 %800, %v374_v12   ;;  %v349_v11 = vld [vmem:[%s1176_s1 + $0x30] sm:$0xff]  ;;  %v346_v12 = vld [vmem:[%s1176_s1 + $0x18] sm:$0xff] }
  0x6a   : > { %414 = vperm.xlu1 %800, %v376_v13   ;;  %v350_v13 = vld [vmem:[%s1176_s1 + $0x38] sm:$0xff] }
  0xac   : > { %v772_v14 = vpop.permute.xlu1 %771  ;;  %v767_v15 = vpop.permute.xlu0 %766 }
  0xad   : > { %v769_v16 = vunpack.i.h.bf16 %v767_v15  ;;  %v768_v17 = vunpack.i.l.bf16 %v767_v15  ;;  %v774_v18 = vunpack.i.h.bf16 %v772_v14  ;;  %v773_v19 = vunpack.i.l.bf16 %v772_v14 }
  0xaf   : > { %v205_v20 = vsel %vm203_vm0, %v768_v17, %v769_v16  ;;  %v224_v28 = vsel %vm222_vm2, %v773_v19, %v774_v18 }
  0xb0   : > { %v777_v21 = vpop.permute.xlu1 %776  ;;  %v198_v22 = vpop.permute.xlu0 %197  ;;  %v678_v23 = vpack.c.bf16 %v205_v20, %v211_v0 }
  0xb1   : > { %v779_v24 = vunpack.i.h.bf16 %v777_v21  ;;  %v778_v25 = vunpack.i.l.bf16 %v777_v21  ;;  %v204_v26 = vsel %vm203_vm0, %v198_v22, %v768_v17 }
  0xb2   : > { %679 = vmatprep.subr.bf16.mxu0 %v678_v23  ;;  %694 = vmatprep.subr.bf16.mxu1 %v678_v23  ;;  %v680_v27 = vpack.c.bf16 %v204_v26, %v191_v3 }
  0xb3   : > { %v243_v29 = vsel %vm241_vm1, %v778_v25, %v779_v24 }
  0xb4   : > { %v236_v30 = vpop.permute.xlu1 %235  ;;  %v217_v31 = vpop.permute.xlu0 %216  ;;  %681 = vmatpush1.bf16.msra.mxu0 %v680_v27  ;;  %699 = vmatpush1.bf16.msra.mxu1 %v680_v27  ;;  %v682_v32 = vpack.c.bf16 %v243_v29, %v224_v28 }
  0xb5   : > { %v242_v33 = vsel %vm241_vm1, %v236_v30, %v778_v25  ;;  %v223_v34 = vsel %vm222_vm2, %v217_v31, %v773_v19 }
  0xb6   : > { %v684_v35 = vpack.c.bf16 %v242_v33, %v223_v34  ;;  %683 = vmatprep.subr.bf16.mxu0 %v682_v32  ;;  %695 = vmatprep.subr.bf16.mxu1 %v682_v32 }
  0xb8   : > { %v787_v36 = vpop.permute.xlu1 %786  ;;  %v782_v37 = vpop.permute.xlu0 %781  ;;  %685 = vmatpush1.bf16.msra.mxu0 %v684_v35  ;;  %700 = vmatpush1.bf16.msra.mxu1 %v684_v35 }
  0xb9   : > { %v789_v38 = vunpack.i.h.bf16 %v787_v36  ;;  %v788_v39 = vunpack.i.l.bf16 %v787_v36  ;;  %v784_v40 = vunpack.i.h.bf16 %v782_v37  ;;  %v783_v41 = vunpack.i.l.bf16 %v782_v37 }
  0xbb   : > { %v262_v42 = vsel %vm260_vm4, %v783_v41, %v784_v40  ;;  %v281_v43 = vsel %vm279_vm3, %v788_v39, %v789_v38 }
  0xbc   : > { %v274_v44 = vpop.permute.xlu1 %273  ;;  %v255_v45 = vpop.permute.xlu0 %254  ;;  %v686_v46 = vpack.c.bf16 %v281_v43, %v262_v42 }
  0xbd   : > { %v280_v47 = vsel %vm279_vm3, %v274_v44, %v788_v39  ;;  %v261_v48 = vsel %vm260_vm4, %v255_v45, %v783_v41 }
  0xbe   : > { %v688_v49 = vpack.c.bf16 %v280_v47, %v261_v48  ;;  %687 = vmatprep.subr.bf16.mxu0 %v686_v46  ;;  %696 = vmatprep.subr.bf16.mxu1 %v686_v46 }
  0xc0   : > { %v797_v50 = vpop.permute.xlu1 %796  ;;  %v792_v51 = vpop.permute.xlu0 %791  ;;  %689 = vmatpush1.bf16.msra.mxu0 %v688_v49  ;;  %701 = vmatpush1.bf16.msra.mxu1 %v688_v49 }
  0xc1   : > { %v799_v52 = vunpack.i.h.bf16 %v797_v50  ;;  %v798_v53 = vunpack.i.l.bf16 %v797_v50  ;;  %v794_v54 = vunpack.i.h.bf16 %v792_v51  ;;  %v793_v55 = vunpack.i.l.bf16 %v792_v51 }
  0xc3   : > { %v300_v56 = vsel %vm298_vm6, %v793_v55, %v794_v54  ;;  %v319_v57 = vsel %vm317_vm5, %v798_v53, %v799_v52 }
  0xc4   : > { %v312_v58 = vpop.permute.xlu1 %311  ;;  %v293_v59 = vpop.permute.xlu0 %292  ;;  %v690_v60 = vpack.c.bf16 %v319_v57, %v300_v56 }
  0xc5   : > { %v318_v61 = vsel %vm317_vm5, %v312_v58, %v798_v53  ;;  %v299_v62 = vsel %vm298_vm6, %v293_v59, %v793_v55 }
  0xc6   : > { %v692_v63 = vpack.c.bf16 %v318_v61, %v299_v62  ;;  %691 = vmatprep.subr.bf16.mxu0 %v690_v60  ;;  %697 = vmatprep.subr.bf16.mxu1 %v690_v60 }
  0xc8   : > { %v335_v0 = vpop.permute.xlu1 %334  ;;  %v333_v1 = vpop.permute.xlu0 %332  ;;  %693 = vmatpush1.bf16.msra.mxu0 %v692_v63  ;;  %702 = vmatpush1.bf16.msra.mxu1 %v692_v63 }
  0xc9   : > { %v338_v2 = vsel %vm336_vm7, %v333_v1, %v335_v0 }
  0xca   : > { %458 = vmatprep.subr.mxu0 %v338_v2  ;;  %698 = vmatprep.subr.mxu1 %v338_v2 }
  0xcc   : > { %v331_v3 = vpop.permute.xlu0 %330 }
  0xcd   : > { %v337_v7 = vsel %vm336_vm7, %v331_v3, %v333_v1 }
  0xce   : > { %459 = vmatpush1.msra.mxu0 %v337_v7  ;;  %703 = vmatpush1.msra.mxu1 %v337_v7 }
  0xcf   : > { %664 = vmatmul.mubr.msk.f32.vlgmr.msra.gmra.mrb[0].mxu0 %vm417_vm8, %v343_v5  ;;  %668 = vmatmul.mubr.msk.f32.vlgmr.msra.gmra.mrb[0].mxu1 %vm417_vm8, %v347_v6 }
  0xd0   : > { %512 = vmatprep.mubr.f32.mxu0 %v908_v4  ;;  %536 = vmatprep.mubr.f32.mxu1 %v908_v4 }
  0xd3   : > { %665 = vmatmul.mubr.msk.f32.gmra.mrb[2].mxu0 %vm417_vm8, %v344_v8  ;;  %669 = vmatmul.mubr.msk.f32.gmra.mrb[2].mxu1 %vm417_vm8, %v348_v9 }
  0xd4   : > { %518 = vmatprep.mubr.f32.mxu0 %v908_v4  ;;  %542 = vmatprep.mubr.f32.mxu1 %v908_v4 }
  0xd7   : > { %666 = vmatmul.mubr.msk.f32.gmra.mrb[4].mxu0 %vm417_vm8, %v345_v10  ;;  %670 = vmatmul.mubr.msk.f32.gmra.mrb[4].mxu1 %vm417_vm8, %v349_v11 }
  0xd8   : > { %524 = vmatprep.mubr.f32.mxu0 %v908_v4  ;;  %548 = vmatprep.mubr.f32.mxu1 %v908_v4 }
  0xd9   : > { %v380_v14 = vpop.permute.xlu1 %379 }
  0xdb   : > { %667 = vmatmul.mubr.msk.f32.gmra.mrb[6].mxu0 %vm417_vm8, %v346_v12  ;;  %671 = vmatmul.mubr.msk.f32.gmra.mrb[6].mxu1 %vm417_vm8, %v350_v13 }
  0xdd   : > { %v390_v15 = vpop.permute.xlu1 %389  ;;  %v385_v16 = vpop.permute.xlu0 %384 }
  0xe1   : > { %v395_v17 = vpop.permute.xlu1 %394  ;;  %v400_v18 = vpop.permute.xlu0 %399 }
  0xe5   : > { %v405_v26 = vpop.permute.xlu1 %404  ;;  %v410_v35 = vpop.permute.xlu0 %409 }
  0xe9   : > { %v415_v44 = vpop.permute.xlu1 %414 }
 0x1a2   : > { %v508_v19 = vpop.f32.mrb[0].mxu0  ;;  %v532_v4 = vpop.f32.mrb[0].mxu1 }
 0x1a3   : > { %v509_v20 = vadd.f32 %v508_v19, %v380_v14  ;;  %v533_v21 = vadd.f32 %v532_v4, %v400_v18  ;;  %v510_v22 = vpop.f32.mrb[1].mxu0  ;;  %v534_v23 = vpop.f32.mrb[1].mxu1 }
 0x1a4   : > { %v511_v24 = vadd.f32 %v510_v22, %v380_v14  ;;  %v535_v25 = vadd.f32 %v534_v23, %v400_v18 }
 0x1a5   : > { %555 = vst [vmem:[%s1106_s11] sm:$0xff] %v509_v20  ;;  %563 = vst [vmem:[%s1106_s11 + $0x40] sm:$0xff] %v533_v21 }
 0x1a6   : > { %556 = vst [vmem:[%s1106_s11 + $0x8] sm:$0xff] %v511_v24  ;;  %564 = vst [vmem:[%s1106_s11 + $0x48] sm:$0xff] %v535_v25  ;;  %v514_v27 = vpop.f32.mrb[2].mxu0  ;;  %v538_v28 = vpop.f32.mrb[2].mxu1 }
 0x1a7   : > { %v515_v29 = vadd.f32 %v514_v27, %v385_v16  ;;  %v539_v30 = vadd.f32 %v538_v28, %v405_v26  ;;  %v516_v31 = vpop.f32.mrb[3].mxu0  ;;  %v540_v32 = vpop.f32.mrb[3].mxu1 }
 0x1a8   : > { %v517_v33 = vadd.f32 %v516_v31, %v385_v16  ;;  %v541_v34 = vadd.f32 %v540_v32, %v405_v26 }
 0x1a9   : > { %557 = vst [vmem:[%s1106_s11 + $0x10] sm:$0xff] %v515_v29  ;;  %565 = vst [vmem:[%s1106_s11 + $0x50] sm:$0xff] %v539_v30 }
 0x1aa   : > { %558 = vst [vmem:[%s1106_s11 + $0x18] sm:$0xff] %v517_v33  ;;  %566 = vst [vmem:[%s1106_s11 + $0x58] sm:$0xff] %v541_v34  ;;  %v520_v36 = vpop.f32.mrb[4].mxu0  ;;  %v544_v37 = vpop.f32.mrb[4].mxu1 }
 0x1ab   : > { %v521_v38 = vadd.f32 %v520_v36, %v390_v15  ;;  %v545_v39 = vadd.f32 %v544_v37, %v410_v35  ;;  %v522_v40 = vpop.f32.mrb[5].mxu0  ;;  %v546_v41 = vpop.f32.mrb[5].mxu1 }
 0x1ac   : > { %v523_v42 = vadd.f32 %v522_v40, %v390_v15  ;;  %v547_v43 = vadd.f32 %v546_v41, %v410_v35 }
 0x1ad   : > { %559 = vst [vmem:[%s1106_s11 + $0x20] sm:$0xff] %v521_v38  ;;  %567 = vst [vmem:[%s1106_s11 + $0x60] sm:$0xff] %v545_v39 }
 0x1ae   : > { %560 = vst [vmem:[%s1106_s11 + $0x28] sm:$0xff] %v523_v42  ;;  %568 = vst [vmem:[%s1106_s11 + $0x68] sm:$0xff] %v547_v43  ;;  %v526_v45 = vpop.f32.mrb[6].mxu0  ;;  %v550_v46 = vpop.f32.mrb[6].mxu1 }
 0x1af   : > { %v527_v47 = vadd.f32 %v526_v45, %v395_v17  ;;  %v551_v48 = vadd.f32 %v550_v46, %v415_v44  ;;  %v528_v49 = vpop.f32.mrb[7].mxu0  ;;  %v552_v50 = vpop.f32.mrb[7].mxu1 }
 0x1b0   : > { %v529_v51 = vadd.f32 %v528_v49, %v395_v17  ;;  %v553_v52 = vadd.f32 %v552_v50, %v415_v44 }
 0x1b1   : > { %561 = vst [vmem:[%s1106_s11 + $0x30] sm:$0xff] %v527_v47  ;;  %569 = vst [vmem:[%s1106_s11 + $0x70] sm:$0xff] %v551_v48 }
 0x1b2   : > { %562 = vst [vmem:[%s1106_s11 + $0x38] sm:$0xff] %v529_v51  ;;  %570 = vst [vmem:[%s1106_s11 + $0x78] sm:$0xff] %v553_v52 }
 0x1b3   : > { %845 = shalt.err (!%p842_p4)
}
 0x1b4   : > { %s846_s30 = scalar_lea.hbm %s1125_s25, 2048  ;;  %s850_s7 = scalar_lea.hbm %s1178_s3, 4096 }
 0x1b5   : > { %p847_p7 = scmp.ne.s32.totalorder %s1125_s25, %s846_s30  ;;  %p851_p0 = scmp.lt.u32.totalorder %s1125_s25, %s1178_s3 }
 0x1b6   : > { %p852_p1 = scmp.lt.u32.totalorder %s850_s7, %s846_s30  ;;  %p854_p6 = scmp.lt.u32.totalorder %s846_s30, %s1125_s25 }
 0x1b7   : > { %p848_p8 = pnand %p847_p7, %p1186_p11 }
 0x1b8   : > { %p853_p3 = por %p852_p1, %p851_p0 }
 0x1b9   : > { %p849_p9 = pneg %p848_p8 }
 0x1ba   : > { %p855_p12 = por %p854_p6, %p853_p3 }
 0x1bc   : > { %p856_p13 = pnand %p855_p12, %p849_p9 }
 0x1be   : > { %859 = shalt.err (!%p856_p13)
}
 0x1bf   : > { %s912_s10 = smov 256   ;;  %s913_s11 = smov 16  }
 0x1c0   : > { %709 = dma.vmem_to_hbm [thread:$0]  (%p1186_p11), %s1127_s19, 2048, %s1125_s25, %s572_s26, %s912_s10, %s912_s10, %s913_s11  }
 0x1c1 PF: > { %s600_s17 = sand.u32 1, %s886_s12   ;;  %p1187_p5 = scmp.ne.s32.totalorder %s1182_s24, 0 }
 0x1c2   : > { %p1188_p10 = scmp.ge.s32.totalorder %s898_s15, 2  ;;  %s601_s20 = scalar_lea.sflag [#allocation5], %s600_s17 }
 0x1c4   : > { %p716_p2 = pnand %p1188_p10, %p1187_p5 }
 0x1c6   : > { %881 = dma.done.wait (!%p716_p2), %s601_s20, 2048  }
 0x1c7   : > { %883 = vsyncadd (!%p716_p2), %s601_s20, 4294965248  ;;  %p16_p4 = scmp.ge.s32.totalorder %s959_s18, 4   ;;  %s1189_s12 = smov %s890_s13 }
 0x1c8   : > { %s1190_s13 = smov %s894_s14  ;;  %s1191_s14 = smov %s971_s21 }
 0x1c9   : > { %s1192_s15 = smov %s959_s18  ;;  %18 = sbr.rel (!%p16_p4) target bundleno = 5 (0x5), region = 77 }
 0x1d0   :  { %606 = vsyncpa [#allocation4], 1 }
 0x1d1   :  { %608 = vsyncpa [#allocation4 + $0x1], 1 }
 0x1d2   :  { %609 = vsyncpa [#allocation5], 1 }
 0x1d3   :  { %611 = vsyncpa [#allocation5 + $0x1], 1 }

</bundles_post_ra>
